<compile_context>
chip_gen: v7x
topology: tpu7x:2x2x1
jax: 0.10.0
libtpu: 0.0.40
codegen_flags: <defaults>
</compile_context>

<pallas_src>
import math
import functools

import jax
import jax.numpy as jnp
from jax.experimental import pallas as pl
from jax.experimental.pallas import tpu as pltpu

LANE = 128


def _round_up(x, m):
    return (x + m - 1) // m * m


def _largest_tile(total, cap, unit=LANE):
    """Largest multiple-of-`unit` divisor of `total` (a multiple of unit) <= cap."""
    q = total // unit
    cap_q = max(1, cap // unit)
    best = 1
    for d in range(1, q + 1):
        if q % d == 0 and d <= cap_q:
            best = d
    return best * unit


def _pad_to(a, shape):
    pads = [(0, t - s) for s, t in zip(a.shape, shape)]
    if any(p[1] for p in pads):
        a = jnp.pad(a, pads)
    return a


def _vmem_budget():
    """(vmem_limit_bytes, tile_budget_bytes) — generation aware, safe fallback."""
    try:
        cap = int(pltpu.get_tpu_info().vmem_capacity_bytes)
    except Exception:
        cap = 64 * 1024 * 1024  # conservative: v7x physical VMEM per TC
    limit = int(cap * 0.75)
    budget = int(limit * 0.7)   # headroom for compiler scratch / misc
    return limit, budget


def _stage2_bytes(tm, tk, tfo, adj_isz, sup_isz):
    # double-buffered inputs + double-buffered f32 output block
    return 2 * (tm * tk * adj_isz + tk * tfo * sup_isz + tfo * 4) + 2 * tm * tfo * 4


def _stage1_bytes(tm, tfi, tfo, x_isz, w_isz, sup_isz):
    return (2 * (tm * tfi * x_isz + tfi * tfo * w_isz + tm * tfo * sup_isz)
            + tm * tfo * 4)


# ---------------------------------------------------------------------------
# Kernel 1: support = x @ w   (tiled over batch, node rows, F_out, F_in)
# ---------------------------------------------------------------------------
def _support_kernel(x_ref, w_ref, o_ref, acc_ref):
    # x_ref: (1, TM, TFI)  w_ref: (TFI, TFO)  o_ref: (1, TM, TFO)
    # acc_ref: (TM, TFO) f32 scratch (F_in contraction accumulator)
    fi = pl.program_id(3)

    @pl.when(fi == 0)
    def _():
        acc_ref[...] = jnp.zeros_like(acc_ref)

    acc_ref[...] += jnp.dot(x_ref[0], w_ref[...],
                            preferred_element_type=jnp.float32)

    @pl.when(fi == pl.num_programs(3) - 1)
    def _():
        o_ref[0] = acc_ref[...].astype(o_ref.dtype)


# ---------------------------------------------------------------------------
# Kernel 2: out = adj @ support + bias   (accumulate directly in o_ref, f32)
# ---------------------------------------------------------------------------
def _aggregate_kernel(adj_ref, sup_ref, b_ref, o_ref):
    # adj_ref: (1, TM, TK)  sup_ref: (1, TK, TFO)  b_ref: (1, 1, TFO)
    # o_ref:   (1, TM, TFO) f32 — VMEM resident across k (constant block index)
    k = pl.program_id(3)

    @pl.when(k == 0)
    def _():
        o_ref[0] = jnp.broadcast_to(b_ref[0], o_ref.shape[1:])

    o_ref[0] += jnp.dot(adj_ref[0], sup_ref[0],
                        preferred_element_type=jnp.float32)


@functools.partial(jax.jit, static_argnames=("compute_dtype", "block_m", "block_k"))
def graph_convolution(x, adj, weight, bias=None, *, compute_dtype=None,
                      block_m=None, block_k=None):
    """Pallas GCN forward.

    x:      (B, N, F_in)
    adj:    (B, N, N)
    weight: (F_in, F_out)
    bias:   (1, 1, F_out) or None
    compute_dtype: dtype fed to the MXU (default f32, matching the PyTorch
        module's `input.float()`); jnp.bfloat16 enables the fast path
        (f32 accumulation, slightly different numerics).
    returns (B, N, F_out) float32.
    """
    B, N, F_in = x.shape
    F_out = weight.shape[-1]

    cdtype = jnp.dtype(compute_dtype) if compute_dtype is not None else jnp.dtype(jnp.float32)
    out_dtype = jnp.float32
    isz = cdtype.itemsize

    vmem_limit, budget = _vmem_budget()

    # --- tile plan (every tile divides its padded dim; padding is minimal) ----
    n_lane = _round_up(N, LANE)        # minimal (8,128)-aligned node dim
    f_out_p = _round_up(F_out, LANE)   # lane-dense output / support features

    tfo = _largest_tile(f_out_p, cap=2048)
    tm = _largest_tile(n_lane, cap=block_m if block_m else 512)
    # v7x megacore: make sure there are >= 2 parallel (batch x row-tile) steps.
    if B * (n_lane // tm) < 2 and n_lane >= 2 * LANE:
        tm = _largest_tile(n_lane, cap=max(LANE, tm // 2))

    # Shrink tfo / tm if even tk=128 would blow the VMEM budget (huge F_out).
    while tfo > LANE and _stage2_bytes(tm, LANE, tfo, isz, isz) > budget:
        tfo = _largest_tile(f_out_p, cap=tfo // 2)
    while tm > LANE and _stage2_bytes(tm, LANE, tfo, isz, isz) > budget:
        tm = _largest_tile(n_lane, cap=tm // 2)

    if block_k:
        tk = _largest_tile(n_lane, cap=block_k)
    else:
        fixed = 2 * tfo * 4 + 2 * tm * tfo * 4
        per_tk = 2 * (tm * isz + tfo * isz)
        tk_cap = max(LANE, (budget - fixed) // per_tk)
        tk = _largest_tile(n_lane, cap=min(tk_cap, 4096))

    m_tiles = n_lane // tm
    k_tiles = n_lane // tk
    fo_tiles = f_out_p // tfo

    # F_in (stage-1 contraction): keep a single full-dim block when it fits the
    # VMEM budget, otherwise pad to a multiple of 128 and tile it.
    if F_in <= 2048 and _stage1_bytes(tm, F_in, tfo, isz, isz, isz) <= budget:
        fi_p, tfi = F_in, F_in
    else:
        fi_p = _round_up(F_in, LANE)
        fixed1 = 2 * tm * tfo * isz + tm * tfo * 4
        per_tfi = 2 * (tm * isz + tfo * isz)
        tfi_cap = max(LANE, (budget - fixed1) // per_tfi)
        tfi = _largest_tile(fi_p, cap=min(tfi_cap, 2048))
    fi_tiles = fi_p // tfi

    # --- operand prep: minimal padding (adj only to round_up(N, 128)) ---------
    # Zero padding is exact: padded x rows / adj rows & cols / weight rows & cols
    # contribute nothing, and padded output rows/cols are sliced off.
    x_c = _pad_to(x.astype(cdtype), (B, n_lane, fi_p))
    adj_c = _pad_to(adj.astype(cdtype), (B, n_lane, n_lane))
    w_c = _pad_to(weight.astype(cdtype), (fi_p, f_out_p))
    if bias is None:
        bias_p = jnp.zeros((1, 1, f_out_p), jnp.float32)
    else:
        bias_p = _pad_to(bias.reshape(1, 1, F_out).astype(jnp.float32),
                         (1, 1, f_out_p))

    # --- stage 1: support = x @ w ---------------------------------------------
    support = pl.pallas_call(
        _support_kernel,
        out_shape=jax.ShapeDtypeStruct((B, n_lane, f_out_p), cdtype),
        grid_spec=pltpu.PrefetchScalarGridSpec(
            num_scalar_prefetch=0,
            grid=(B, m_tiles, fo_tiles, fi_tiles),
            in_specs=[
                pl.BlockSpec((1, tm, tfi), lambda b, m, fo, fi: (b, m, fi)),
                pl.BlockSpec((tfi, tfo), lambda b, m, fo, fi: (fi, fo)),
            ],
            out_specs=pl.BlockSpec((1, tm, tfo), lambda b, m, fo, fi: (b, m, fo)),
            scratch_shapes=[pltpu.VMEM((tm, tfo), jnp.float32)],
        ),
        compiler_params=pltpu.CompilerParams(
            dimension_semantics=("parallel", "parallel", "parallel", "arbitrary"),
            vmem_limit_bytes=vmem_limit),
        cost_estimate=pl.CostEstimate(
            flops=2 * B * n_lane * fi_p * f_out_p,
            transcendentals=0,
            bytes_accessed=(fo_tiles * B * n_lane * fi_p * isz
                            + B * m_tiles * fi_p * f_out_p * isz
                            + B * n_lane * f_out_p * isz)),
    )(x_c, w_c)

    # --- stage 2: out = adj @ support + bias -----------------------------------
    out_p = pl.pallas_call(
        _aggregate_kernel,
        out_shape=jax.ShapeDtypeStruct((B, n_lane, f_out_p), out_dtype),
        grid_spec=pltpu.PrefetchScalarGridSpec(
            num_scalar_prefetch=0,
            grid=(B, m_tiles, fo_tiles, k_tiles),
            in_specs=[
                pl.BlockSpec((1, tm, tk), lambda b, m, fo, k: (b, m, k)),
                pl.BlockSpec((1, tk, tfo), lambda b, m, fo, k: (b, k, fo)),
                pl.BlockSpec((1, 1, tfo), lambda b, m, fo, k: (0, 0, fo)),
            ],
            out_specs=pl.BlockSpec((1, tm, tfo), lambda b, m, fo, k: (b, m, fo)),
        ),
        compiler_params=pltpu.CompilerParams(
            dimension_semantics=("parallel", "parallel", "parallel", "arbitrary"),
            vmem_limit_bytes=vmem_limit),
        cost_estimate=pl.CostEstimate(
            flops=2 * B * n_lane * n_lane * f_out_p,
            transcendentals=0,
            bytes_accessed=(fo_tiles * B * n_lane * n_lane * isz
                            + m_tiles * B * n_lane * f_out_p * isz   # support re-read per m tile
                            + f_out_p * 4
                            + B * n_lane * f_out_p * 4)),
    )(adj_c, support, bias_p)

    return out_p[:, :N, :F_out]


def init_gcn_params(key, in_features, out_features, bias=False):
    """Parameter init matching GraphConvolution.reset_parameters."""
    stdv = 1.0 / math.sqrt(out_features)
    kw, kb = jax.random.split(key)
    weight = jax.random.uniform(
        kw, (in_features, out_features), jnp.float32, minval=-stdv, maxval=stdv)
    b = None
    if bias:
        b = jax.random.uniform(
            kb, (1, 1, out_features), jnp.float32, minval=-stdv, maxval=stdv)
    return weight, b


if __name__ == "__main__":
    key = jax.random.PRNGKey(0)
    k1, k2, k3, k4, k5, k6, k7, k8, k9 = jax.random.split(key, 9)

    # ---- test 1: tiny shapes, bias=False (module default), f32 ----
    B, N, F_in, F_out = 2, 8, 16, 32
    x = jax.random.normal(k1, (B, N, F_in), jnp.float32)
    adj_raw = jax.random.uniform(k2, (B, N, N), jnp.float32)
    adj = adj_raw / jnp.sum(adj_raw, axis=-1, keepdims=True)
    weight, _ = init_gcn_params(k3, F_in, F_out, bias=False)

    out = jax.block_until_ready(graph_convolution(x, adj, weight))
    ref = jnp.matmul(adj, jnp.matmul(x, weight))
    assert out.shape == (B, N, F_out)
    assert jnp.allclose(out, ref, atol=1e-3, rtol=1e-3)

    # ---- test 2: bias=True, non-aligned N/F_out, auto tile selection ----
    B2, N2, F_in2, F_out2 = 2, 200, 48, 96
    x2 = jax.random.normal(k4, (B2, N2, F_in2), jnp.float32)
    adj2_raw = jax.random.uniform(k5, (B2, N2, N2), jnp.float32)
    adj2 = adj2_raw / jnp.sum(adj2_raw, axis=-1, keepdims=True)
    w2, b2 = init_gcn_params(k6, F_in2, F_out2, bias=True)

    out2 = jax.block_until_ready(graph_convolution(x2, adj2, w2, b2))
    ref2 = jnp.matmul(adj2, jnp.matmul(x2, w2)) + b2
    assert out2.shape == (B2, N2, F_out2)
    assert jnp.allclose(out2, ref2, atol=1e-3, rtol=1e-3)

    # ---- test 3: forced small tiles -> multi-step contraction (bias init at
    #              k==0, in-place o_ref accumulation across k) ----
    out3 = jax.block_until_ready(
        graph_convolution(x2, adj2, w2, b2, block_m=128, block_k=128))
    assert out3.shape == (B2, N2, F_out2)
    assert jnp.allclose(out3, ref2, atol=1e-3, rtol=1e-3)

    # ---- test 4: bf16 compute path (MXU operands bf16, f32 accumulate) ----
    out4 = jax.block_until_ready(
        graph_convolution(x2, adj2, w2, b2, compute_dtype=jnp.bfloat16))
    assert out4.shape == (B2, N2, F_out2)
    assert jnp.allclose(out4, ref2, atol=5e-2, rtol=5e-2)

    # ---- test 5: large F_in exercises the tiled F_in contraction in stage 1 ----
    B5, N5, F_in5, F_out5 = 1, 128, 2304, 64
    x5 = jax.random.normal(k7, (B5, N5, F_in5), jnp.float32)
    adj5_raw = jax.random.uniform(k8, (B5, N5, N5), jnp.float32)
    adj5 = adj5_raw / jnp.sum(adj5_raw, axis=-1, keepdims=True)
    w5, _ = init_gcn_params(k9, F_in5, F_out5, bias=False)

    out5 = jax.block_until_ready(graph_convolution(x5, adj5, w5))
    ref5 = jnp.matmul(adj5, jnp.matmul(x5, w5))
    assert out5.shape == (B5, N5, F_out5)
    assert jnp.allclose(out5, ref5, atol=5e-3, rtol=5e-3)

    print("KERNEL_OK")
</pallas_src>

<mosaic_0001>
module attributes {stable_mosaic.version = 11 : i64} {
  func.func @_support_kernel(%arg0: i32, %arg1: i32, %arg2: i32, %arg3: i32, %arg4: memref<1x128x16xf32, #tpu.memory_space<vmem>>, %arg5: memref<16x128xf32, #tpu.memory_space<vmem>>, %arg6: memref<1x128x128xf32, #tpu.memory_space<vmem>>, %arg7: memref<128x128xf32, #tpu.memory_space<vmem>>) attributes {dimension_semantics = [#tpu.dimension_semantics<parallel>, #tpu.dimension_semantics<parallel>, #tpu.dimension_semantics<parallel>, #tpu.dimension_semantics<arbitrary>], iteration_bounds = array<i64: 2, 1, 1, 1>, scalar_prefetch = 0 : i64, scratch_operands = 1 : i64, tpu.core_type = #tpu.core_type<tc>, window_params = [{transform_indices = @transform_0, window_bounds = array<i64: 1, 128, 16>}, {transform_indices = @transform_1, window_bounds = array<i64: 16, 128>}, {transform_indices = @transform_2, window_bounds = array<i64: 1, 128, 128>}]} {
    %c0_i32 = arith.constant 0 : i32
    %0 = arith.cmpi eq, %arg3, %c0_i32 : i32
    %1 = arith.extui %0 : i1 to i32
    %c0_i32_0 = arith.constant 0 : i32
    %2 = arith.cmpi ne, %1, %c0_i32_0 : i32
    scf.if %2 {
      %cst_11 = arith.constant 0.000000e+00 : f32
      %13 = vector.broadcast %cst_11 : f32 to vector<128x128xf32>
      %c0_12 = arith.constant 0 : index
      %c0_13 = arith.constant 0 : index
      %14 = vector.load %arg7[%c0_12, %c0_13] : memref<128x128xf32, #tpu.memory_space<vmem>>, vector<128x128xf32>
      tpu.vector_store %arg7[%c0_12, %c0_13], %13 {strides = array<i32>} : memref<128x128xf32, #tpu.memory_space<vmem>>, vector<128x128xf32>,
    } else {
    }
    %c0 = arith.constant 0 : index
    %c0_1 = arith.constant 0 : index
    %3 = vector.load %arg7[%c0, %c0_1] : memref<128x128xf32, #tpu.memory_space<vmem>>, vector<128x128xf32>
    %c0_2 = arith.constant 0 : index
    %c0_3 = arith.constant 0 : index
    %c0_4 = arith.constant 0 : index
    %4 = vector.load %arg4[%c0_2, %c0_3, %c0_4] : memref<1x128x16xf32, #tpu.memory_space<vmem>>, vector<1x128x16xf32>
    %5 = vector.shape_cast %4 : vector<1x128x16xf32> to vector<128x16xf32>
    %c0_5 = arith.constant 0 : index
    %c0_6 = arith.constant 0 : index
    %6 = vector.load %arg5[%c0_5, %c0_6] : memref<16x128xf32, #tpu.memory_space<vmem>>, vector<16x128xf32>
    %cst = arith.constant dense<0.000000e+00> : vector<128x128xf32>
    %7 = tpu.matmul %5, %6, %cst {dimension_numbers = #tpu.dot_dimension_numbers<[1], [0], [0], [1], [0, 0, 1, 1], [], []>} : vector<128x16xf32>, vector<16x128xf32>, vector<128x128xf32> -> vector<128x128xf32>
    %8 = arith.addf %3, %7 : vector<128x128xf32>
    %c0_7 = arith.constant 0 : index
    %c0_8 = arith.constant 0 : index
    %9 = vector.load %arg7[%c0_7, %c0_8] : memref<128x128xf32, #tpu.memory_space<vmem>>, vector<128x128xf32>
    tpu.vector_store %arg7[%c0_7, %c0_8], %8 {strides = array<i32>} : memref<128x128xf32, #tpu.memory_space<vmem>>, vector<128x128xf32>,
    %c0_i32_9 = arith.constant 0 : i32
    %10 = arith.cmpi eq, %arg3, %c0_i32_9 : i32
    %11 = arith.extui %10 : i1 to i32
    %c0_i32_10 = arith.constant 0 : i32
    %12 = arith.cmpi ne, %11, %c0_i32_10 : i32
    scf.if %12 {
      %c0_11 = arith.constant 0 : index
      %c0_12 = arith.constant 0 : index
      %13 = vector.load %arg7[%c0_11, %c0_12] : memref<128x128xf32, #tpu.memory_space<vmem>>, vector<128x128xf32>
      %c0_13 = arith.constant 0 : index
      %c0_14 = arith.constant 0 : index
      %c0_15 = arith.constant 0 : index
      %14 = vector.load %arg6[%c0_13, %c0_14, %c0_15] : memref<1x128x128xf32, #tpu.memory_space<vmem>>, vector<1x128x128xf32>
      %15 = vector.shape_cast %14 : vector<1x128x128xf32> to vector<128x128xf32>
      %16 = vector.shape_cast %13 : vector<128x128xf32> to vector<1x128x128xf32>
      tpu.vector_store %arg6[%c0_13, %c0_14, %c0_15], %16 {strides = array<i32>} : memref<1x128x128xf32, #tpu.memory_space<vmem>>, vector<1x128x128xf32>,
    } else {
    }
    return
  }
  func.func @transform_0(%arg0: i32, %arg1: i32, %arg2: i32, %arg3: i32) -> (i32, i32, i32) {
    %c0_i32 = arith.constant 0 : i32
    return %arg0, %arg1, %arg3 : i32, i32, i32
  }
  func.func @transform_1(%arg0: i32, %arg1: i32, %arg2: i32, %arg3: i32) -> (i32, i32) {
    %c0_i32 = arith.constant 0 : i32
    return %arg3, %arg2 : i32, i32
  }
  func.func @transform_2(%arg0: i32, %arg1: i32, %arg2: i32, %arg3: i32) -> (i32, i32, i32) {
    %c0_i32 = arith.constant 0 : i32
    return %arg0, %arg1, %arg2 : i32, i32, i32
  }
}

module attributes {stable_mosaic.version = 11 : i64} {
  func.func @_aggregate_kernel(%arg0: i32, %arg1: i32, %arg2: i32, %arg3: i32, %arg4: memref<1x128x128xf32, #tpu.memory_space<vmem>>, %arg5: memref<1x128x128xf32, #tpu.memory_space<vmem>>, %arg6: memref<1x1x128xf32, #tpu.memory_space<vmem>>, %arg7: memref<1x128x128xf32, #tpu.memory_space<vmem>>) attributes {dimension_semantics = [#tpu.dimension_semantics<parallel>, #tpu.dimension_semantics<parallel>, #tpu.dimension_semantics<parallel>, #tpu.dimension_semantics<arbitrary>], iteration_bounds = array<i64: 2, 1, 1, 1>, scalar_prefetch = 0 : i64, scratch_operands = 0 : i64, tpu.core_type = #tpu.core_type<tc>, window_params = [{transform_indices = @transform_0, window_bounds = array<i64: 1, 128, 128>}, {transform_indices = @transform_1, window_bounds = array<i64: 1, 128, 128>}, {transform_indices = @transform_2, window_bounds = array<i64: 1, 1, 128>}, {transform_indices = @transform_3, window_bounds = array<i64: 1, 128, 128>}]} {
    %c0_i32 = arith.constant 0 : i32
    %0 = arith.cmpi eq, %arg3, %c0_i32 : i32
    %1 = arith.extui %0 : i1 to i32
    %c0_i32_0 = arith.constant 0 : i32
    %2 = arith.cmpi ne, %1, %c0_i32_0 : i32
    scf.if %2 {
      %c0_12 = arith.constant 0 : index
      %c0_13 = arith.constant 0 : index
      %c0_14 = arith.constant 0 : index
      %14 = vector.load %arg6[%c0_12, %c0_13, %c0_14] : memref<1x1x128xf32, #tpu.memory_space<vmem>>, vector<1x1x128xf32>
      %15 = vector.shape_cast %14 : vector<1x1x128xf32> to vector<1x128xf32>
      %16 = vector.shape_cast %15 : vector<1x128xf32> to vector<1x128xf32>
      %17 = vector.broadcast %16 : vector<1x128xf32> to vector<128x128xf32>
      %c0_15 = arith.constant 0 : index
      %c0_16 = arith.constant 0 : index
      %c0_17 = arith.constant 0 : index
      %18 = vector.load %arg7[%c0_15, %c0_16, %c0_17] : memref<1x128x128xf32, #tpu.memory_space<vmem>>, vector<1x128x128xf32>
      %19 = vector.shape_cast %18 : vector<1x128x128xf32> to vector<128x128xf32>
      %20 = vector.shape_cast %17 : vector<128x128xf32> to vector<1x128x128xf32>
      tpu.vector_store %arg7[%c0_15, %c0_16, %c0_17], %20 {strides = array<i32>} : memref<1x128x128xf32, #tpu.memory_space<vmem>>, vector<1x128x128xf32>,
    } else {
    }
    %c0 = arith.constant 0 : index
    %c0_1 = arith.constant 0 : index
    %c0_2 = arith.constant 0 : index
    %3 = vector.load %arg7[%c0, %c0_1, %c0_2] : memref<1x128x128xf32, #tpu.memory_space<vmem>>, vector<1x128x128xf32>
    %4 = vector.shape_cast %3 : vector<1x128x128xf32> to vector<128x128xf32>
    %c0_3 = arith.constant 0 : index
    %c0_4 = arith.constant 0 : index
    %c0_5 = arith.constant 0 : index
    %5 = vector.load %arg4[%c0_3, %c0_4, %c0_5] : memref<1x128x128xf32, #tpu.memory_space<vmem>>, vector<1x128x128xf32>
    %6 = vector.shape_cast %5 : vector<1x128x128xf32> to vector<128x128xf32>
    %c0_6 = arith.constant 0 : index
    %c0_7 = arith.constant 0 : index
    %c0_8 = arith.constant 0 : index
    %7 = vector.load %arg5[%c0_6, %c0_7, %c0_8] : memref<1x128x128xf32, #tpu.memory_space<vmem>>, vector<1x128x128xf32>
    %8 = vector.shape_cast %7 : vector<1x128x128xf32> to vector<128x128xf32>
    %cst = arith.constant dense<0.000000e+00> : vector<128x128xf32>
    %9 = tpu.matmul %6, %8, %cst {dimension_numbers = #tpu.dot_dimension_numbers<[1], [0], [0], [1], [0, 0, 1, 1], [], []>} : vector<128x128xf32>, vector<128x128xf32>, vector<128x128xf32> -> vector<128x128xf32>
    %10 = arith.addf %4, %9 : vector<128x128xf32>
    %c0_9 = arith.constant 0 : index
    %c0_10 = arith.constant 0 : index
    %c0_11 = arith.constant 0 : index
    %11 = vector.load %arg7[%c0_9, %c0_10, %c0_11] : memref<1x128x128xf32, #tpu.memory_space<vmem>>, vector<1x128x128xf32>
    %12 = vector.shape_cast %11 : vector<1x128x128xf32> to vector<128x128xf32>
    %13 = vector.shape_cast %10 : vector<128x128xf32> to vector<1x128x128xf32>
    tpu.vector_store %arg7[%c0_9, %c0_10, %c0_11], %13 {strides = array<i32>} : memref<1x128x128xf32, #tpu.memory_space<vmem>>, vector<1x128x128xf32>,
    return
  }
  func.func @transform_0(%arg0: i32, %arg1: i32, %arg2: i32, %arg3: i32) -> (i32, i32, i32) {
    %c0_i32 = arith.constant 0 : i32
    return %arg0, %arg1, %arg3 : i32, i32, i32
  }
  func.func @transform_1(%arg0: i32, %arg1: i32, %arg2: i32, %arg3: i32) -> (i32, i32, i32) {
    %c0_i32 = arith.constant 0 : i32
    return %arg0, %arg3, %arg2 : i32, i32, i32
  }
  func.func @transform_2(%arg0: i32, %arg1: i32, %arg2: i32, %arg3: i32) -> (i32, i32, i32) {
    %c0_i32 = arith.constant 0 : i32
    %c0_i32_0 = arith.constant 0 : i32
    %c0_i32_1 = arith.constant 0 : i32
    return %c0_i32, %c0_i32_0, %arg2 : i32, i32, i32
  }
  func.func @transform_3(%arg0: i32, %arg1: i32, %arg2: i32, %arg3: i32) -> (i32, i32, i32) {
    %c0_i32 = arith.constant 0 : i32
    return %arg0, %arg1, %arg2 : i32, i32, i32
  }
}

</mosaic_0001>

<bundles_post_ra>
// kernel: graph_convolution.2
= control target key start
LH: loop header
LB: loop body
LE: loop exit
PB: predicated region body
PF: predicated region fallthrough
CT: control target
= control target key end

     0   :  { %s833_s9 = smov 0   ;;  %s835_s10 = smov 0   ;;  %s913_s0 = inlined_call_operand.vmem [shape: f32[2,128,16], index: 0, kind: input, shape index: {}]   ;;  %s914_s1 = inlined_call_operand.vmem [shape: f32[16,128], index: 1, kind: input, shape index: {}]   ;;  %s915_s2 = inlined_call_operand.vmem [shape: f32[2,128,128], index: 2, kind: output, shape index: {}]  }
   0x1   :  { %s837_s11 = smov 0  }
   0x2 LB: > { %s38_s12 = sadd.s32 1, %s812_s10  ;;  %p693_p0 = scmp.ge.s32.totalorder %s816_s11, 1  ;;  %s816_s11 = sphi %s837_s11, %s12_s11   ;;  %s812_s10 = sphi %s835_s10, %s917_s10   ;;  %s808_s9 = sphi %s833_s9, %s916_s9  }
   0x3   : > { %p40_p1 = scmp.ge.s32.totalorder %s38_s12, 2  ;;  %p170_p2 = scmp.lt.s32.totalorder %s816_s11, 3 }
   0x5   : > { %s919_s12 = smov (%p40_p1, %s38_s12), 0  ;;  %p171_p3 = pnand %p693_p0, %p170_p2 }
   0x6   : > { %v301_v0 = vld [vmem:[%s914_s1] sm:$0xff] (!%p171_p3)  ;;  %v302_v1 = vld [vmem:[%s914_s1 + $0x8] sm:$0xff] (!%p171_p3)  ;;  %p215_p4 = scmp.lt.s32.totalorder (!%p171_p3), %s808_s9, 1  ;;  %vm303_vm0 = vcmask (!%p171_p3), 130048  }
   0x7   : > { %174 = sbr.rel (%p171_p3) target bundleno = 246 (0xf6), region = 28  ;;  %v764_v2 = vpack.c.bf16 (!%p171_p3), %v302_v1, %v301_v0 }
   0x9   : > { %765 = vmatprep.subr.bf16.mxu0 (!%p171_p3), %v764_v2  ;;  %768 = vmatprep.subr.bf16.mxu1 (!%p171_p3), %v764_v2 }
   0xa   : > { %767 = vmatpush3.bf16.msra.mxu0 (!%p171_p3), %v764_v2  ;;  %769 = vmatpush3.bf16.msra.mxu1 (!%p171_p3), %v764_v2 }
   0xe   : > { %s921_s9 = smov (!%p215_p4, %s808_s9), 1 }
   0xf   : > { %s716_s17 = sshll.u32 %s921_s9, 7 }
  0x10   : > { %s225_s20 = scalar_lea.vmem %s913_s0, %s716_s17  ;;  %s886_s23 = scalar_lea.vmem %s915_s2, %s716_s17 }
  0x11   : > { %v285_v3 = vld [vmem:[%s225_s20] sm:$0xff]  ;;  %v286_v5 = vld [vmem:[%s225_s20 + $0x8] sm:$0xff]  ;;  %v287_v7 = vld [vmem:[%s225_s20 + $0x10] sm:$0xff] }
  0x12   : > { %v293_v4 = vld [vmem:[%s225_s20 + $0x40] sm:$0xff]  ;;  %740 = vmatprep.mubr.msk.f32.mxu0 %vm303_vm0, %v285_v3  ;;  %v294_v6 = vld [vmem:[%s225_s20 + $0x48] sm:$0xff]  ;;  %v295_v8 = vld [vmem:[%s225_s20 + $0x50] sm:$0xff] }
  0x13   : > { %752 = vmatprep.mubr.msk.f32.mxu1 %vm303_vm0, %v293_v4  ;;  %741 = vmatmul.mubr.msk.f32.vlgmr.msra.gmra.mrb[0].mxu0 %vm303_vm0, %v286_v5  ;;  %v288_v9 = vld [vmem:[%s225_s20 + $0x18] sm:$0xff]  ;;  %v289_v11 = vld [vmem:[%s225_s20 + $0x20] sm:$0xff]  ;;  %v290_v13 = vld [vmem:[%s225_s20 + $0x28] sm:$0xff] }
  0x14   : > { %753 = vmatmul.mubr.msk.f32.vlgmr.msra.gmra.mrb[0].mxu1 %vm303_vm0, %v294_v6  ;;  %743 = vmatprep.mubr.msk.f32.mxu0 %vm303_vm0, %v287_v7  ;;  %v296_v10 = vld [vmem:[%s225_s20 + $0x58] sm:$0xff]  ;;  %v297_v12 = vld [vmem:[%s225_s20 + $0x60] sm:$0xff]  ;;  %v298_v14 = vld [vmem:[%s225_s20 + $0x68] sm:$0xff] }
  0x15   : > { %755 = vmatprep.mubr.msk.f32.mxu1 %vm303_vm0, %v295_v8  ;;  %v291_v15 = vld [vmem:[%s225_s20 + $0x30] sm:$0xff]  ;;  %v292_v17 = vld [vmem:[%s225_s20 + $0x38] sm:$0xff] }
  0x16   : > { %v299_v16 = vld [vmem:[%s225_s20 + $0x70] sm:$0xff]  ;;  %v300_v18 = vld [vmem:[%s225_s20 + $0x78] sm:$0xff] }
  0x17   : > { %744 = vmatmul.mubr.msk.f32.gmra.mrb[2].mxu0 %vm303_vm0, %v288_v9 }
  0x18   : > { %756 = vmatmul.mubr.msk.f32.gmra.mrb[2].mxu1 %vm303_vm0, %v296_v10  ;;  %746 = vmatprep.mubr.msk.f32.mxu0 %vm303_vm0, %v289_v11 }
  0x19   : > { %758 = vmatprep.mubr.msk.f32.mxu1 %vm303_vm0, %v297_v12 }
  0x1b   : > { %747 = vmatmul.mubr.msk.f32.gmra.mrb[4].mxu0 %vm303_vm0, %v290_v13 }
  0x1c   : > { %759 = vmatmul.mubr.msk.f32.gmra.mrb[4].mxu1 %vm303_vm0, %v298_v14  ;;  %749 = vmatprep.mubr.msk.f32.mxu0 %vm303_vm0, %v291_v15 }
  0x1d   : > { %761 = vmatprep.mubr.msk.f32.mxu1 %vm303_vm0, %v299_v16 }
  0x1f   : > { %750 = vmatmul.mubr.msk.f32.gmra.mrb[6].mxu0 %vm303_vm0, %v292_v17 }
  0x20   : > { %762 = vmatmul.mubr.msk.f32.gmra.mrb[6].mxu1 %vm303_vm0, %v300_v18 }
  0xe6   : > { %v742_v19 = vpop.f32.mrb[0].mxu0 }
  0xe7   : > { %v754_v20 = vpop.f32.mrb[0].mxu1  ;;  %549 = vst [vmem:[%s886_s23 + $0x8] sm:$0xff] %v742_v19  ;;  %v418_v21 = vpop.f32.mrb[1].mxu0 }
  0xe8   : > { %557 = vst [vmem:[%s886_s23 + $0x48] sm:$0xff] %v754_v20  ;;  %v458_v22 = vpop.f32.mrb[1].mxu1  ;;  %548 = vst [vmem:[%s886_s23] sm:$0xff] %v418_v21 }
  0xe9   : > { %556 = vst [vmem:[%s886_s23 + $0x40] sm:$0xff] %v458_v22 }
  0xea   : > { %v745_v23 = vpop.f32.mrb[2].mxu0 }
  0xeb   : > { %v757_v24 = vpop.f32.mrb[2].mxu1  ;;  %551 = vst [vmem:[%s886_s23 + $0x18] sm:$0xff] %v745_v23  ;;  %v428_v25 = vpop.f32.mrb[3].mxu0 }
  0xec   : > { %559 = vst [vmem:[%s886_s23 + $0x58] sm:$0xff] %v757_v24  ;;  %v468_v26 = vpop.f32.mrb[3].mxu1  ;;  %550 = vst [vmem:[%s886_s23 + $0x10] sm:$0xff] %v428_v25 }
  0xed   : > { %558 = vst [vmem:[%s886_s23 + $0x50] sm:$0xff] %v468_v26 }
  0xee   : > { %v748_v27 = vpop.f32.mrb[4].mxu0 }
  0xef   : > { %v760_v28 = vpop.f32.mrb[4].mxu1  ;;  %553 = vst [vmem:[%s886_s23 + $0x28] sm:$0xff] %v748_v27  ;;  %v438_v29 = vpop.f32.mrb[5].mxu0 }
  0xf0   : > { %561 = vst [vmem:[%s886_s23 + $0x68] sm:$0xff] %v760_v28  ;;  %v478_v30 = vpop.f32.mrb[5].mxu1  ;;  %552 = vst [vmem:[%s886_s23 + $0x20] sm:$0xff] %v438_v29 }
  0xf1   : > { %560 = vst [vmem:[%s886_s23 + $0x60] sm:$0xff] %v478_v30 }
  0xf2   : > { %v751_v31 = vpop.f32.mrb[6].mxu0 }
  0xf3   : > { %v763_v32 = vpop.f32.mrb[6].mxu1  ;;  %555 = vst [vmem:[%s886_s23 + $0x38] sm:$0xff] %v751_v31  ;;  %v448_v33 = vpop.f32.mrb[7].mxu0 }
  0xf4   : > { %563 = vst [vmem:[%s886_s23 + $0x78] sm:$0xff] %v763_v32  ;;  %v488_v34 = vpop.f32.mrb[7].mxu1  ;;  %554 = vst [vmem:[%s886_s23 + $0x30] sm:$0xff] %v448_v33 }
  0xf5   : > { %562 = vst [vmem:[%s886_s23 + $0x70] sm:$0xff] %v488_v34 }
  0xf6 PF: > { %s12_s11 = sadd.s32 1, %s816_s11   ;;  %s916_s9 = smov %s812_s10 }
  0xf7   : > { %p9_p5 = scmp.ge.s32.totalorder %s12_s11, 4   ;;  %s917_s10 = smov %s919_s12 }
  0xf9   :  { %11 = sbr.rel (!%p9_p5) target bundleno = 2 (0x2), region = 69 }

// kernel: graph_convolution.3
= control target key start
LH: loop header
LB: loop body
LE: loop exit
PB: predicated region body
PF: predicated region fallthrough
CT: control target
= control target key end

     0   :  { %s917_s12 = smov 0   ;;  %s919_s13 = smov 0   ;;  %s1015_s0 = inlined_call_operand.vmem [shape: f32[2,128,128], index: 0, kind: input, shape index: {}]   ;;  %s1016_s1 = inlined_call_operand.vmem [shape: f32[2,128,128], index: 1, kind: input, shape index: {}]   ;;  %s1017_s2 = inlined_call_operand.vmem [shape: f32[1,1,128], index: 2, kind: input, shape index: {}]   ;;  %s1018_s3 = inlined_call_operand.vmem [shape: f32[2,128,128], index: 3, kind: output, shape index: {}]  }
   0x1   :  { %s921_s14 = smov 0  }
   0x2 LB: > { %s39_s15 = sadd.s32 1, %s891_s13  ;;  %p700_p0 = scmp.ge.s32.totalorder %s895_s14, 1  ;;  %s895_s14 = sphi %s921_s14, %s13_s14   ;;  %s891_s13 = sphi %s919_s13, %s1020_s13   ;;  %s887_s12 = sphi %s917_s12, %s1019_s12  }
   0x3   : > { %p41_p1 = scmp.ge.s32.totalorder %s39_s15, 2  ;;  %p209_p2 = scmp.lt.s32.totalorder %s895_s14, 3 }
   0x5   : > { %s1022_s15 = smov (%p41_p1, %s39_s15), 0  ;;  %p210_p3 = pnand %p700_p0, %p209_p2 }
   0x6   : > { %p263_p4 = scmp.lt.s32.totalorder (!%p210_p3), %s887_s12, 1  ;;  %v707_v40 = vld [vmem:[%s1017_s2] ss:$0 sm:$0xff] (!%p210_p3) }
   0x7   : > { %213 = sbr.rel (%p210_p3) target bundleno = 280 (0x118), region = 32 }
   0xe   : > { %s1024_s12 = smov (!%p263_p4, %s887_s12), 1 }
   0xf   : > { %s935_s16 = sshll.u32 %s1024_s12, 7 }
  0x10   : > { %s941_s19 = scalar_lea.vmem %s1016_s1, %s935_s16  ;;  %s953_s22 = scalar_lea.vmem %s1015_s0, %s935_s16 }
  0x11   : > { %v363_v0 = vld [vmem:[%s941_s19] sm:$0xff]  ;;  %v364_v1 = vld [vmem:[%s941_s19 + $0x8] sm:$0xff]  ;;  %v365_v2 = vld [vmem:[%s941_s19 + $0x10] sm:$0xff]  ;;  %s988_s27 = scalar_lea.vmem %s1018_s3, %s935_s16 }
  0x12   : > { %v801_v3 = vpack.c.bf16 %v364_v1, %v363_v0  ;;  %v366_v4 = vld [vmem:[%s941_s19 + $0x18] sm:$0xff]  ;;  %v367_v6 = vld [vmem:[%s941_s19 + $0x20] sm:$0xff]  ;;  %v368_v7 = vld [vmem:[%s941_s19 + $0x28] sm:$0xff] }
  0x13   : > { %v805_v5 = vpack.c.bf16 %v366_v4, %v365_v2  ;;  %v809_v8 = vpack.c.bf16 %v368_v7, %v367_v6  ;;  %v347_v9 = vld [vmem:[%s953_s22] sm:$0xff]  ;;  %v369_v11 = vld [vmem:[%s941_s19 + $0x30] sm:$0xff]  ;;  %v370_v12 = vld [vmem:[%s941_s19 + $0x38] sm:$0xff] }
  0x14   : > { %802 = vmatprep.subr.bf16.mxu0 %v801_v3  ;;  %833 = vmatprep.subr.bf16.mxu1 %v801_v3  ;;  %v355_v10 = vld [vmem:[%s953_s22 + $0x40] sm:$0xff]  ;;  %v813_v13 = vpack.c.bf16 %v370_v12, %v369_v11  ;;  %v372_v15 = vld [vmem:[%s941_s19 + $0x48] sm:$0xff]  ;;  %v373_v17 = vld [vmem:[%s941_s19 + $0x50] sm:$0xff] }
  0x15   : > { %804 = vmatpush3.bf16.msra.mxu0 %v801_v3  ;;  %841 = vmatpush3.bf16.msra.mxu1 %v801_v3  ;;  %v371_v14 = vld [vmem:[%s941_s19 + $0x40] sm:$0xff]  ;;  %v374_v18 = vld [vmem:[%s941_s19 + $0x58] sm:$0xff]  ;;  %v376_v21 = vld [vmem:[%s941_s19 + $0x68] sm:$0xff] }
  0x16   : > { %806 = vmatprep.subr.bf16.mxu0 %v805_v5  ;;  %834 = vmatprep.subr.bf16.mxu1 %v805_v5  ;;  %v817_v16 = vpack.c.bf16 %v372_v15, %v371_v14  ;;  %v821_v19 = vpack.c.bf16 %v374_v18, %v373_v17  ;;  %v375_v20 = vld [vmem:[%s941_s19 + $0x60] sm:$0xff]  ;;  %v377_v23 = vld [vmem:[%s941_s19 + $0x70] sm:$0xff]  ;;  %v378_v24 = vld [vmem:[%s941_s19 + $0x78] sm:$0xff] }
  0x17   : > { %777 = vmatprep.mubr.f32.mxu0 %v347_v9  ;;  %789 = vmatprep.mubr.f32.mxu1 %v355_v10  ;;  %v825_v22 = vpack.c.bf16 %v376_v21, %v375_v20  ;;  %v829_v25 = vpack.c.bf16 %v378_v24, %v377_v23  ;;  %v348_v26 = vld [vmem:[%s953_s22 + $0x8] sm:$0xff]  ;;  %v349_v28 = vld [vmem:[%s953_s22 + $0x10] sm:$0xff]  ;;  %v350_v30 = vld [vmem:[%s953_s22 + $0x18] sm:$0xff] }
  0x18   : > { %v356_v27 = vld [vmem:[%s953_s22 + $0x48] sm:$0xff]  ;;  %v357_v29 = vld [vmem:[%s953_s22 + $0x50] sm:$0xff]  ;;  %v358_v31 = vld [vmem:[%s953_s22 + $0x58] sm:$0xff] }
  0x19   : > { %808 = vmatpush3.bf16.msra.mxu0 %v805_v5  ;;  %842 = vmatpush3.bf16.msra.mxu1 %v805_v5  ;;  %v351_v32 = vld [vmem:[%s953_s22 + $0x20] sm:$0xff]  ;;  %v352_v34 = vld [vmem:[%s953_s22 + $0x28] sm:$0xff]  ;;  %v353_v36 = vld [vmem:[%s953_s22 + $0x30] sm:$0xff] }
  0x1a   : > { %810 = vmatprep.subr.bf16.mxu0 %v809_v8  ;;  %835 = vmatprep.subr.bf16.mxu1 %v809_v8  ;;  %v359_v33 = vld [vmem:[%s953_s22 + $0x60] sm:$0xff]  ;;  %v360_v35 = vld [vmem:[%s953_s22 + $0x68] sm:$0xff]  ;;  %v361_v37 = vld [vmem:[%s953_s22 + $0x70] sm:$0xff] }
  0x1b   : > { %v354_v38 = vld [vmem:[%s953_s22 + $0x38] sm:$0xff] }
  0x1c   : > { %v362_v39 = vld [vmem:[%s953_s22 + $0x78] sm:$0xff] }
  0x1d   : > { %812 = vmatpush3.bf16.msra.mxu0 %v809_v8  ;;  %843 = vmatpush3.bf16.msra.mxu1 %v809_v8 }
  0x1e   : > { %814 = vmatprep.subr.bf16.mxu0 %v813_v13  ;;  %836 = vmatprep.subr.bf16.mxu1 %v813_v13 }
  0x21   : > { %816 = vmatpush3.bf16.msra.mxu0 %v813_v13  ;;  %844 = vmatpush3.bf16.msra.mxu1 %v813_v13 }
  0x22   : > { %818 = vmatprep.subr.bf16.mxu0 %v817_v16  ;;  %837 = vmatprep.subr.bf16.mxu1 %v817_v16 }
  0x25   : > { %820 = vmatpush3.bf16.msra.mxu0 %v817_v16  ;;  %845 = vmatpush3.bf16.msra.mxu1 %v817_v16 }
  0x26   : > { %822 = vmatprep.subr.bf16.mxu0 %v821_v19  ;;  %838 = vmatprep.subr.bf16.mxu1 %v821_v19 }
  0x29   : > { %824 = vmatpush3.bf16.msra.mxu0 %v821_v19  ;;  %846 = vmatpush3.bf16.msra.mxu1 %v821_v19 }
  0x2a   : > { %826 = vmatprep.subr.bf16.mxu0 %v825_v22  ;;  %839 = vmatprep.subr.bf16.mxu1 %v825_v22 }
  0x2d   : > { %828 = vmatpush3.bf16.msra.mxu0 %v825_v22  ;;  %847 = vmatpush3.bf16.msra.mxu1 %v825_v22 }
  0x2e   : > { %830 = vmatprep.subr.bf16.mxu0 %v829_v25  ;;  %840 = vmatprep.subr.bf16.mxu1 %v829_v25 }
  0x31   : > { %832 = vmatpush3.bf16.msra.mxu0 %v829_v25  ;;  %848 = vmatpush3.bf16.msra.mxu1 %v829_v25 }
  0x34   : > { %778 = vmatmul.mubr.f32.vlgmr.msra.gmra.mrb[0].mxu0 %v348_v26  ;;  %790 = vmatmul.mubr.f32.vlgmr.msra.gmra.mrb[0].mxu1 %v356_v27 }
  0x35   : > { %780 = vmatprep.mubr.f32.mxu0 %v349_v28  ;;  %792 = vmatprep.mubr.f32.mxu1 %v357_v29 }
  0x38   : > { %781 = vmatmul.mubr.f32.gmra.mrb[2].mxu0 %v350_v30  ;;  %793 = vmatmul.mubr.f32.gmra.mrb[2].mxu1 %v358_v31 }
  0x39   : > { %783 = vmatprep.mubr.f32.mxu0 %v351_v32  ;;  %795 = vmatprep.mubr.f32.mxu1 %v359_v33 }
  0x3c   : > { %784 = vmatmul.mubr.f32.gmra.mrb[4].mxu0 %v352_v34  ;;  %796 = vmatmul.mubr.f32.gmra.mrb[4].mxu1 %v360_v35 }
  0x3d   : > { %786 = vmatprep.mubr.f32.mxu0 %v353_v36  ;;  %798 = vmatprep.mubr.f32.mxu1 %v361_v37 }
  0x40   : > { %787 = vmatmul.mubr.f32.gmra.mrb[6].mxu0 %v354_v38  ;;  %799 = vmatmul.mubr.f32.gmra.mrb[6].mxu1 %v362_v39 }
 0x107   : > { %v779_v41 = vpop.f32.mrb[0].mxu0  ;;  %v791_v42 = vpop.f32.mrb[0].mxu1 }
 0x108   : > { %v525_v43 = vadd.f32 %v779_v41, %v707_v40  ;;  %v533_v44 = vadd.f32 %v791_v42, %v707_v40  ;;  %v445_v45 = vpop.f32.mrb[1].mxu0  ;;  %v485_v46 = vpop.f32.mrb[1].mxu1 }
 0x109   : > { %v524_v47 = vadd.f32 %v707_v40, %v445_v45  ;;  %v532_v48 = vadd.f32 %v707_v40, %v485_v46 }
 0x10a   : > { %541 = vst [vmem:[%s988_s27 + $0x8] sm:$0xff] %v525_v43  ;;  %549 = vst [vmem:[%s988_s27 + $0x48] sm:$0xff] %v533_v44 }
 0x10b   : > { %540 = vst [vmem:[%s988_s27] sm:$0xff] %v524_v47  ;;  %548 = vst [vmem:[%s988_s27 + $0x40] sm:$0xff] %v532_v48  ;;  %v782_v49 = vpop.f32.mrb[2].mxu0  ;;  %v794_v50 = vpop.f32.mrb[2].mxu1 }
 0x10c   : > { %v527_v51 = vadd.f32 %v782_v49, %v707_v40  ;;  %v535_v52 = vadd.f32 %v794_v50, %v707_v40  ;;  %v455_v53 = vpop.f32.mrb[3].mxu0  ;;  %v495_v54 = vpop.f32.mrb[3].mxu1 }
 0x10d   : > { %v526_v55 = vadd.f32 %v707_v40, %v455_v53  ;;  %v534_v56 = vadd.f32 %v707_v40, %v495_v54 }
 0x10e   : > { %543 = vst [vmem:[%s988_s27 + $0x18] sm:$0xff] %v527_v51  ;;  %551 = vst [vmem:[%s988_s27 + $0x58] sm:$0xff] %v535_v52 }
 0x10f   : > { %542 = vst [vmem:[%s988_s27 + $0x10] sm:$0xff] %v526_v55  ;;  %550 = vst [vmem:[%s988_s27 + $0x50] sm:$0xff] %v534_v56  ;;  %v785_v57 = vpop.f32.mrb[4].mxu0  ;;  %v797_v58 = vpop.f32.mrb[4].mxu1 }
 0x110   : > { %v529_v59 = vadd.f32 %v785_v57, %v707_v40  ;;  %v537_v60 = vadd.f32 %v797_v58, %v707_v40  ;;  %v465_v61 = vpop.f32.mrb[5].mxu0  ;;  %v505_v62 = vpop.f32.mrb[5].mxu1 }
 0x111   : > { %v528_v63 = vadd.f32 %v707_v40, %v465_v61  ;;  %v536_v0 = vadd.f32 %v707_v40, %v505_v62 }
 0x112   : > { %545 = vst [vmem:[%s988_s27 + $0x28] sm:$0xff] %v529_v59  ;;  %553 = vst [vmem:[%s988_s27 + $0x68] sm:$0xff] %v537_v60 }
 0x113   : > { %544 = vst [vmem:[%s988_s27 + $0x20] sm:$0xff] %v528_v63  ;;  %552 = vst [vmem:[%s988_s27 + $0x60] sm:$0xff] %v536_v0  ;;  %v788_v1 = vpop.f32.mrb[6].mxu0  ;;  %v800_v2 = vpop.f32.mrb[6].mxu1 }
 0x114   : > { %v531_v3 = vadd.f32 %v788_v1, %v707_v40  ;;  %v539_v4 = vadd.f32 %v800_v2, %v707_v40  ;;  %v475_v5 = vpop.f32.mrb[7].mxu0  ;;  %v515_v6 = vpop.f32.mrb[7].mxu1 }
 0x115   : > { %v530_v7 = vadd.f32 %v707_v40, %v475_v5  ;;  %v538_v8 = vadd.f32 %v707_v40, %v515_v6 }
 0x116   : > { %547 = vst [vmem:[%s988_s27 + $0x38] sm:$0xff] %v531_v3  ;;  %555 = vst [vmem:[%s988_s27 + $0x78] sm:$0xff] %v539_v4 }
 0x117   : > { %546 = vst [vmem:[%s988_s27 + $0x30] sm:$0xff] %v530_v7  ;;  %554 = vst [vmem:[%s988_s27 + $0x70] sm:$0xff] %v538_v8 }
 0x118 PF: > { %s13_s14 = sadd.s32 1, %s895_s14   ;;  %s1019_s12 = smov %s891_s13 }
 0x119   : > { %p10_p5 = scmp.ge.s32.totalorder %s13_s14, 4   ;;  %s1020_s13 = smov %s1022_s15 }
 0x11b   :  { %12 = sbr.rel (!%p10_p5) target bundleno = 2 (0x2), region = 72 }

</bundles_post_ra>
